<compile_context>
chip_gen: v6e
topology: v6e:2x2x1
jax: 0.10.0
libtpu: 0.0.40
codegen_flags: <defaults>
</compile_context>

<pallas_src>
import functools

import jax
import jax.numpy as jnp
from jax import lax
from jax.experimental import pallas as pl
from jax.experimental.pallas import tpu as pltpu


# ---------------------------------------------------------------------------
# Kernel: one batch tile of the fused eval-mode MLP, (features, TB) layout.
# ---------------------------------------------------------------------------
def net_kernel(x_ref, w1_ref, b1_ref, w2_ref, b2_ref, w3_ref, b3_ref, out_ref):
    x = x_ref[...]                                                   # (TB, D)

    # Layer 1 (BN1 folded): (H1, D) x (TB, D) contract D -> (H1, TB).
    # NT contraction so x needs no transpose anywhere.
    h = lax.dot_general(
        w1_ref[...], x,
        dimension_numbers=(((1,), (1,)), ((), ())),
        preferred_element_type=jnp.float32,
    )
    h = jnp.maximum(h + b1_ref[...], 0.0)                            # (H1, TB)

    # Layer 2 (BN2 folded): (H2, H1) x (H1, TB) -> (H2, TB).
    h = jnp.dot(w2_ref[...], h, preferred_element_type=jnp.float32)
    h = jnp.maximum(h + b2_ref[...], 0.0)                            # (H2, TB)

    # Layer 3 (BN3 folded): (1, H2) x (H2, TB) -> (1, TB); b3 is an SMEM scalar.
    z = jnp.dot(w3_ref[...], h, preferred_element_type=jnp.float32) + b3_ref[0, 0]

    # Sigmoid: exp lands on the EUP; exact reciprocal keeps f32 semantics.
    out_ref[0] = pl.reciprocal(1.0 + jnp.exp(-z))                    # (1, TB)


# ---------------------------------------------------------------------------
# Wrapper: batch-tiled pallas_call (weights resident, x double-buffered).
# ---------------------------------------------------------------------------
@functools.partial(jax.jit, static_argnames=("tile_b",))
def net_forward(x, folded, *, tile_b=4096):
    """x: (B, D) float32. Returns (B,) float32, matching mlp(x).view(-1)."""
    B, D = x.shape
    H1 = folded["w1"].shape[0]
    H2 = folded["w2"].shape[0]

    # Tile size: multiple of 8 sublanes, don't over-pad tiny batches, and
    # (megacore) force >= 2 tiles whenever B > 8 so both v7x TCs get work.
    B_pad8 = ((B + 7) // 8) * 8
    tb = min(max(8, (tile_b // 8) * 8), B_pad8)
    if B_pad8 > 8:
        half = (((B_pad8 + 1) // 2) + 7) // 8 * 8
        tb = min(tb, half)
    num_tiles = pl.cdiv(B_pad8, tb)
    B_pad = num_tiles * tb
    if B_pad != B:
        x = jnp.pad(x, ((0, B_pad - B), (0, 0)))

    def const_spec(shape):
        # Full-array block, constant index map -> weights stay VMEM-resident.
        return pl.BlockSpec(shape, lambda i: tuple(0 for _ in shape))

    out = pl.pallas_call(
        net_kernel,
        out_shape=jax.ShapeDtypeStruct((num_tiles, 1, tb), jnp.float32),
        grid=(num_tiles,),
        in_specs=[
            pl.BlockSpec((tb, D), lambda i: (i, 0)),                  # x: batch-tiled
            const_spec((H1, D)), const_spec((H1, 1)),                 # folded Linear 1
            const_spec((H2, H1)), const_spec((H2, 1)),                # folded Linear 2
            const_spec((1, H2)),                                      # folded Linear 3 weight
            pl.BlockSpec(memory_space=pltpu.MemorySpace.SMEM),        # folded b3 scalar
        ],
        out_specs=pl.BlockSpec((1, 1, tb), lambda i: (i, 0, 0)),      # lane-dense rows
        compiler_params=pltpu.CompilerParams(
            dimension_semantics=("parallel",),        # batch tiles -> both TCs on v7x
            vmem_limit_bytes=48 * 1024 * 1024,        # headroom for big tiles (v5e: 16 MiB default)
        ),
    )(x, folded["w1"], folded["b1"], folded["w2"], folded["b2"],
      folded["w3"], folded["b3"])

    return out.reshape(B_pad)[:B]


# ---------------------------------------------------------------------------
# Parameter prep: PyTorch-layout params -> BN folded into Linear weights,
# kept in the (out_features, in_features) orientation the kernel wants.
# ---------------------------------------------------------------------------
def fold_params(raw, eps=1e-5):
    def bn_affine(g, b, mean, var):
        s = g / jnp.sqrt(var + eps)
        return s, b - mean * s

    s1, t1 = bn_affine(raw["bn1_g"], raw["bn1_b"], raw["bn1_m"], raw["bn1_v"])
    s2, t2 = bn_affine(raw["bn2_g"], raw["bn2_b"], raw["bn2_m"], raw["bn2_v"])
    s3, t3 = bn_affine(raw["bn3_g"], raw["bn3_b"], raw["bn3_m"], raw["bn3_v"])

    # Linear(W, b)(x*s + t) == (W * s[None,:]) applied to x, plus (W @ t + b).
    w1f = raw["w1"] * s1[None, :]                        # (H1, D)
    b1f = (raw["w1"] @ t1 + raw["b1"])[:, None]          # (H1, 1) column bias
    w2f = raw["w2"] * s2[None, :]                        # (H2, H1)
    b2f = (raw["w2"] @ t2 + raw["b2"])[:, None]          # (H2, 1) column bias
    w3f = raw["w3"] * s3[None, :]                        # (1, H2)
    b3f = (raw["w3"] @ t3 + raw["b3"]).reshape(1, 1)     # (1, 1) SMEM scalar

    return dict(w1=w1f, b1=b1f, w2=w2f, b2=b2f, w3=w3f, b3=b3f)


def make_raw_params(key, input_size, m1, m2):
    h1, h2 = m1 * input_size, m2 * input_size
    ks = jax.random.split(key, 12)

    def linear(kw, kb, fan_in, fan_out):
        bound = 1.0 / jnp.sqrt(fan_in)
        w = jax.random.uniform(kw, (fan_out, fan_in), jnp.float32, -bound, bound)
        b = jax.random.uniform(kb, (fan_out,), jnp.float32, -bound, bound)
        return w, b

    def bn(kg, kb, n):
        g = 1.0 + 0.1 * jax.random.normal(kg, (n,), jnp.float32)
        b = 0.1 * jax.random.normal(kb, (n,), jnp.float32)
        m = 0.05 * jax.random.normal(jax.random.fold_in(kb, 1), (n,), jnp.float32)
        v = jnp.abs(1.0 + 0.1 * jax.random.normal(jax.random.fold_in(kg, 1), (n,), jnp.float32))
        return g, b, m, v

    p = {}
    p["bn1_g"], p["bn1_b"], p["bn1_m"], p["bn1_v"] = bn(ks[0], ks[1], input_size)
    p["w1"], p["b1"] = linear(ks[2], ks[3], input_size, h1)
    p["bn2_g"], p["bn2_b"], p["bn2_m"], p["bn2_v"] = bn(ks[4], ks[5], h1)
    p["w2"], p["b2"] = linear(ks[6], ks[7], h1, h2)
    p["bn3_g"], p["bn3_b"], p["bn3_m"], p["bn3_v"] = bn(ks[8], ks[9], h2)
    p["w3"], p["b3"] = linear(ks[10], ks[11], h2, 1)
    return p


def net_forward_ref(x, p, eps=1e-5):
    """Pure-JAX reference using UNfolded params (BN applied explicitly)."""
    def bn(h, g, b, m, v):
        return (h - m) / jnp.sqrt(v + eps) * g + b

    h = bn(x, p["bn1_g"], p["bn1_b"], p["bn1_m"], p["bn1_v"])
    h = jnp.maximum(h @ p["w1"].T + p["b1"], 0.0)
    h = bn(h, p["bn2_g"], p["bn2_b"], p["bn2_m"], p["bn2_v"])
    h = jnp.maximum(h @ p["w2"].T + p["b2"], 0.0)
    h = bn(h, p["bn3_g"], p["bn3_b"], p["bn3_m"], p["bn3_v"])
    z = h @ p["w3"].T + p["b3"]
    return jax.nn.sigmoid(z).reshape(-1)


if __name__ == "__main__":
    input_size, m1, m2 = 16, 2, 4       # hidden1=32, hidden2=64; m1 != 0 -> no shortcut branch
    batch = 8
    # TODO(synk): training-mode Dropout (random masking) / batch-stat BatchNorm are not
    # implemented; this kernel reproduces the eval-mode forward (Dropout=identity, BN running stats).

    key = jax.random.PRNGKey(0)
    kx, kp = jax.random.split(key)
    x = jax.random.normal(kx, (batch, input_size), jnp.float32)

    raw = make_raw_params(kp, input_size, m1, m2)
    folded = fold_params(raw)

    out = jax.block_until_ready(net_forward(x, folded))
    ref = net_forward_ref(x, raw)

    assert out.shape == (batch,)
    assert jnp.allclose(out, ref, atol=1e-5, rtol=1e-5), float(jnp.max(jnp.abs(out - ref)))
    print("KERNEL_OK")
</pallas_src>

<mosaic_0001>
module attributes {stable_mosaic.version = 11 : i64} {
  func.func @net_kernel(%arg0: i32, %arg1: memref<8x16xf32, #tpu.memory_space<vmem>>, %arg2: memref<32x16xf32, #tpu.memory_space<vmem>>, %arg3: memref<32x1xf32, #tpu.memory_space<vmem>>, %arg4: memref<64x32xf32, #tpu.memory_space<vmem>>, %arg5: memref<64x1xf32, #tpu.memory_space<vmem>>, %arg6: memref<1x64xf32, #tpu.memory_space<vmem>>, %arg7: memref<1x1xf32, #tpu.memory_space<smem>>, %arg8: memref<1x1x8xf32, #tpu.memory_space<vmem>>) attributes {dimension_semantics = [#tpu.dimension_semantics<parallel>], iteration_bounds = array<i64: 1>, scalar_prefetch = 0 : i64, scratch_operands = 0 : i64, tpu.core_type = #tpu.core_type<tc>, window_params = [{transform_indices = @transform_0, window_bounds = array<i64: 8, 16>}, {pipeline_mode = #tpu.pipeline_mode<synchronous>, transform_indices = @transform_1, window_bounds = array<i64: 32, 16>}, {pipeline_mode = #tpu.pipeline_mode<synchronous>, transform_indices = @transform_2, window_bounds = array<i64: 32, 1>}, {pipeline_mode = #tpu.pipeline_mode<synchronous>, transform_indices = @transform_3, window_bounds = array<i64: 64, 32>}, {pipeline_mode = #tpu.pipeline_mode<synchronous>, transform_indices = @transform_4, window_bounds = array<i64: 64, 1>}, {pipeline_mode = #tpu.pipeline_mode<synchronous>, transform_indices = @transform_5, window_bounds = array<i64: 1, 64>}, {transform_indices = @transform_6, window_bounds = array<i64: 1, 1>}, {transform_indices = @transform_7, window_bounds = array<i64: 1, 1, 8>}]} {
    %c0 = arith.constant 0 : index
    %c0_0 = arith.constant 0 : index
    %0 = vector.load %arg1[%c0, %c0_0] : memref<8x16xf32, #tpu.memory_space<vmem>>, vector<8x16xf32>
    %c0_1 = arith.constant 0 : index
    %c0_2 = arith.constant 0 : index
    %1 = vector.load %arg2[%c0_1, %c0_2] : memref<32x16xf32, #tpu.memory_space<vmem>>, vector<32x16xf32>
    %cst = arith.constant dense<0.000000e+00> : vector<32x8xf32>
    %2 = tpu.matmul %1, %0, %cst {dimension_numbers = #tpu.dot_dimension_numbers<[1], [1], [0], [0], [0, 0, 1, 0], [], []>} : vector<32x16xf32>, vector<8x16xf32>, vector<32x8xf32> -> vector<32x8xf32>
    %c0_3 = arith.constant 0 : index
    %c0_4 = arith.constant 0 : index
    %3 = vector.load %arg3[%c0_3, %c0_4] : memref<32x1xf32, #tpu.memory_space<vmem>>, vector<32x1xf32>
    %4 = vector.broadcast %3 : vector<32x1xf32> to vector<32x8xf32>
    %5 = arith.addf %2, %4 : vector<32x8xf32>
    %cst_5 = arith.constant 0.000000e+00 : f32
    %6 = vector.broadcast %cst_5 : f32 to vector<32x8xf32>
    %7 = arith.maximumf %5, %6 : vector<32x8xf32>
    %c0_6 = arith.constant 0 : index
    %c0_7 = arith.constant 0 : index
    %8 = vector.load %arg4[%c0_6, %c0_7] : memref<64x32xf32, #tpu.memory_space<vmem>>, vector<64x32xf32>
    %cst_8 = arith.constant dense<0.000000e+00> : vector<64x8xf32>
    %9 = tpu.matmul %8, %7, %cst_8 {dimension_numbers = #tpu.dot_dimension_numbers<[1], [0], [0], [1], [0, 0, 1, 1], [], []>} : vector<64x32xf32>, vector<32x8xf32>, vector<64x8xf32> -> vector<64x8xf32>
    %c0_9 = arith.constant 0 : index
    %c0_10 = arith.constant 0 : index
    %10 = vector.load %arg5[%c0_9, %c0_10] : memref<64x1xf32, #tpu.memory_space<vmem>>, vector<64x1xf32>
    %11 = vector.broadcast %10 : vector<64x1xf32> to vector<64x8xf32>
    %12 = arith.addf %9, %11 : vector<64x8xf32>
    %cst_11 = arith.constant 0.000000e+00 : f32
    %13 = vector.broadcast %cst_11 : f32 to vector<64x8xf32>
    %14 = arith.maximumf %12, %13 : vector<64x8xf32>
    %c0_12 = arith.constant 0 : index
    %c0_13 = arith.constant 0 : index
    %15 = vector.load %arg6[%c0_12, %c0_13] : memref<1x64xf32, #tpu.memory_space<vmem>>, vector<1x64xf32>
    %cst_14 = arith.constant dense<0.000000e+00> : vector<1x8xf32>
    %16 = tpu.matmul %15, %14, %cst_14 {dimension_numbers = #tpu.dot_dimension_numbers<[1], [0], [0], [1], [0, 0, 1, 1], [], []>} : vector<1x64xf32>, vector<64x8xf32>, vector<1x8xf32> -> vector<1x8xf32>
    %c0_15 = arith.constant 0 : index
    %c0_16 = arith.constant 0 : index
    %17 = memref.load %arg7[%c0_15, %c0_16] : memref<1x1xf32, #tpu.memory_space<smem>>
    %18 = vector.broadcast %17 : f32 to vector<1x8xf32>
    %19 = arith.addf %16, %18 : vector<1x8xf32>
    %cst_17 = arith.constant 0.000000e+00 : f32
    %20 = vector.broadcast %cst_17 : f32 to vector<1x8xf32>
    %21 = arith.subf %20, %19 : vector<1x8xf32>
    %22 = math.exp %21 : vector<1x8xf32>
    %cst_18 = arith.constant 1.000000e+00 : f32
    %23 = vector.broadcast %cst_18 : f32 to vector<1x8xf32>
    %24 = arith.addf %23, %22 : vector<1x8xf32>
    %25 = tpu.reciprocal %24 : vector<1x8xf32> -> vector<1x8xf32>
    %c0_19 = arith.constant 0 : index
    %c0_20 = arith.constant 0 : index
    %c0_21 = arith.constant 0 : index
    %26 = vector.load %arg8[%c0_19, %c0_20, %c0_21] : memref<1x1x8xf32, #tpu.memory_space<vmem>>, vector<1x1x8xf32>
    %27 = vector.shape_cast %26 : vector<1x1x8xf32> to vector<1x8xf32>
    %28 = vector.shape_cast %25 : vector<1x8xf32> to vector<1x1x8xf32>
    tpu.vector_store %arg8[%c0_19, %c0_20, %c0_21], %28 {strides = array<i32>} : memref<1x1x8xf32, #tpu.memory_space<vmem>>, vector<1x1x8xf32>,
    return
  }
  func.func @transform_0(%arg0: i32) -> (i32, i32) {
    %c0_i32 = arith.constant 0 : i32
    %c0_i32_0 = arith.constant 0 : i32
    return %arg0, %c0_i32 : i32, i32
  }
  func.func @transform_1(%arg0: i32) -> (i32, i32) {
    %c0_i32 = arith.constant 0 : i32
    %c0_i32_0 = arith.constant 0 : i32
    %c0_i32_1 = arith.constant 0 : i32
    return %c0_i32, %c0_i32_0 : i32, i32
  }
  func.func @transform_2(%arg0: i32) -> (i32, i32) {
    %c0_i32 = arith.constant 0 : i32
    %c0_i32_0 = arith.constant 0 : i32
    %c0_i32_1 = arith.constant 0 : i32
    return %c0_i32, %c0_i32_0 : i32, i32
  }
  func.func @transform_3(%arg0: i32) -> (i32, i32) {
    %c0_i32 = arith.constant 0 : i32
    %c0_i32_0 = arith.constant 0 : i32
    %c0_i32_1 = arith.constant 0 : i32
    return %c0_i32, %c0_i32_0 : i32, i32
  }
  func.func @transform_4(%arg0: i32) -> (i32, i32) {
    %c0_i32 = arith.constant 0 : i32
    %c0_i32_0 = arith.constant 0 : i32
    %c0_i32_1 = arith.constant 0 : i32
    return %c0_i32, %c0_i32_0 : i32, i32
  }
  func.func @transform_5(%arg0: i32) -> (i32, i32) {
    %c0_i32 = arith.constant 0 : i32
    %c0_i32_0 = arith.constant 0 : i32
    %c0_i32_1 = arith.constant 0 : i32
    return %c0_i32, %c0_i32_0 : i32, i32
  }
  func.func @transform_6(%arg0: i32) -> (i32, i32) {
    %c0_i32 = arith.constant 0 : i32
    %c0_i32_0 = arith.constant 0 : i32
    %c0_i32_1 = arith.constant 0 : i32
    return %c0_i32, %c0_i32_0 : i32, i32
  }
  func.func @transform_7(%arg0: i32) -> (i32, i32, i32) {
    %c0_i32 = arith.constant 0 : i32
    %c0_i32_0 = arith.constant 0 : i32
    %c0_i32_1 = arith.constant 0 : i32
    return %arg0, %c0_i32, %c0_i32_0 : i32, i32, i32
  }
}

</mosaic_0001>

<bundles_post_ra>
// kernel: net_forward.1
= control target key start
LH: loop header
LB: loop body
LE: loop exit
PB: predicated region body
PF: predicated region fallthrough
CT: control target
= control target key end

     0   :  { %vm57_vm0 = vcmask 130048   ;;  %v573_v4 = vmov 0   ;;  %s715_s0 = inlined_call_operand.vmem [shape: f32[8,16], index: 0, kind: input, shape index: {}]   ;;  %s716_s1 = inlined_call_operand.vmem [shape: f32[32,16], index: 1, kind: input, shape index: {}]   ;;  %s717_s2 = inlined_call_operand.vmem [shape: f32[32,1], index: 2, kind: input, shape index: {}]   ;;  %s718_s3 = inlined_call_operand.vmem [shape: f32[64,32], index: 3, kind: input, shape index: {}]   ;;  %s719_s4 = inlined_call_operand.vmem [shape: f32[64,1], index: 4, kind: input, shape index: {}]   ;;  %s720_s5 = inlined_call_operand.vmem [shape: f32[1,64], index: 5, kind: input, shape index: {}]   ;;  %s721_s6 = inlined_call_operand.<no memory space> [shape: f32[1,1], index: 6, kind: input, shape index: {}]   ;;  %s722_s7 = inlined_call_operand.hbm [shape: f32[1,1,8], index: 7, kind: output, shape index: {}]  }
   0x1   :  { %v28_v0 = vld [vmem:[%s715_s0] sm:$0xff]  ;;  %v36_v2 = vld [vmem:[%s717_s2 + $0x18] sm:$0xff]  ;;  %v30_v3 = vld [vmem:[%s716_s1 + $0x8] sm:$0xff]  ;;  %545 = vset.pattern.permute.xlu0 %v573_v4  ;;  %546 = vset.pattern.permute.xlu1 %v573_v4 }
   0x2   :  { %v29_v1 = vld [vmem:[%s716_s1] sm:$0xff]  ;;  %494 = vmatprep.subr.msk.mxu0 %vm57_vm0, %v28_v0  ;;  %v34_v5 = vld [vmem:[%s717_s2 + $0x8] sm:$0xff]  ;;  %v31_v6 = vld [vmem:[%s716_s1 + $0x10] sm:$0xff]  ;;  %54 = vperm.xlu0 %545, %v36_v2  }
   0x3   :  { %496 = vmatprep.mubr.msk.f32.mxu0 %vm57_vm0, %v29_v1  ;;  %495 = vmatpush3.xpose.msk.msra.mxu0 %vm57_vm0, %v28_v0  ;;  %v35_v7 = vld [vmem:[%s717_s2 + $0x10] sm:$0xff]  ;;  %v33_v8 = vld [vmem:[%s717_s2] sm:$0xff] }
   0x4   :  { %44 = vperm.xlu1 %546, %v34_v5  }
   0x6   :  { %497 = vmatmul.mubr.msk.f32.vlgmr.msra.gmra.mxu0 %vm57_vm0, %v30_v3 }
   0x7   :  { %13 = vsyncpa [#allocation4], 0  ;;  %499 = vmatprep.mubr.msk.f32.mxu0 %vm57_vm0, %v31_v6  ;;  %v32_v9 = vld [vmem:[%s716_s1 + $0x18] sm:$0xff]  ;;  %49 = vperm.xlu0 %545, %v35_v7   ;;  %v176_v11 = vld [vmem:[%s719_s4 + $0x30] sm:$0xff]  ;;  %vm218_vm1 = vcmask 261120   ;;  %v574_v42 = vmov 0.0  }
   0x8   :  { %v177_v10 = vld [vmem:[%s719_s4 + $0x38] sm:$0xff]  ;;  %39 = vperm.xlu1 %546, %v33_v8   ;;  %v175_v12 = vld [vmem:[%s719_s4 + $0x28] sm:$0xff]  ;;  %v174_v13 = vld [vmem:[%s719_s4 + $0x20] sm:$0xff]  ;;  %522 = vmatprep.subr.mxu0 %v574_v42  ;;  %vm575_vm2 = vmmov 0   ;;  %vm359_vm3 = vcmask 523264   ;;  %s576_s24 = smov [#allocation3]  }
   0x9   :  { %v173_v14 = vld [vmem:[%s719_s4 + $0x18] sm:$0xff]  ;;  %v172_v15 = vld [vmem:[%s719_s4 + $0x10] sm:$0xff]  ;;  %v171_v16 = vld [vmem:[%s719_s4 + $0x8] sm:$0xff]  ;;  %s446_s25 = sshll.u32 %s576_s24, 4  ;;  %vm438_vm4 = vcmask 57344   ;;  %s447_s25 = int_to_ptr.vmem [resolvable:$true] %s446_s25 }
   0xa   :  { %500 = vmatmul.mubr.msk.f32.gmra.mxu0 %vm57_vm0, %v32_v9  ;;  %v170_v17 = vld [vmem:[%s719_s4] sm:$0xff]  ;;  %v163_v35 = vld [vmem:[%s718_s3 + $0x8] sm:$0xff]  ;;  %v164_v36 = vld [vmem:[%s718_s3 + $0x10] sm:$0xff]  ;;  %s555_s26 = scalar_lea.vmem %s447_s25, 32  ;;  %p556_p1 = scmp.lt.s32.totalorder %s447_s25, %s447_s25 }
   0xb   :  { %215 = vperm.xlu0 %545, %v177_v10   ;;  %v162_v18 = vld [vmem:[%s718_s3] sm:$0xff]  ;;  %v165_v37 = vld [vmem:[%s718_s3 + $0x18] sm:$0xff]  ;;  %v167_v39 = vld [vmem:[%s718_s3 + $0x28] sm:$0xff]  ;;  %538 = vmatprep.mubr.msk.f32.mxu0 %vm575_vm2, %v574_v42 }
   0xc   :  { %210 = vperm.xlu1 %546, %v176_v11   ;;  %510 = vmatprep.mubr.msk.f32.mxu1 %vm218_vm1, %v162_v18  ;;  %v166_v38 = vld [vmem:[%s718_s3 + $0x20] sm:$0xff]  ;;  %v168_v40 = vld [vmem:[%s718_s3 + $0x30] sm:$0xff]  ;;  %v169_v41 = vld [vmem:[%s718_s3 + $0x38] sm:$0xff] }
   0xd   :  { %v356_v11 = vld [vmem:[%s720_s5] sm:$0x1]  ;;  %s551_s5 = scalar_lea.vmem %s447_s25, 16 }
   0xe   :  { %p552_p0 = scmp.ne.s32.totalorder %s447_s25, %s551_s5  ;;  %p557_p2 = scmp.lt.s32.totalorder %s555_s26, %s551_s5 }
   0xf   :  { %205 = vperm.xlu0 %545, %v175_v12   ;;  %v358_v12 = vstv %s721_s6 }
  0x10   :  { %200 = vperm.xlu1 %546, %v174_v13   ;;  %p558_p3 = por %p557_p2, %p556_p1 }
  0x12   :  { %p559_p4 = pnand %p558_p3, %p552_p0 }
  0x13   :  { %195 = vperm.xlu0 %545, %v173_v14  }
  0x14   :  { %190 = vperm.xlu1 %546, %v172_v15  }
  0x17   :  { %185 = vperm.xlu0 %545, %v171_v16  }
  0x18   :  { %180 = vperm.xlu1 %546, %v170_v17  }
  0x7d   :  { %v55_v19 = vpop.permute.xlu0 %54 }
  0x7f   :  { %v45_v21 = vpop.permute.xlu1 %44 }
  0x82   :  { %v50_v25 = vpop.permute.xlu0 %49 }
  0x83   :  { %v40_v30 = vpop.permute.xlu1 %39 }
  0x86   :  { %v216_v45 = vpop.permute.xlu0 %215 }
  0x87   :  { %v211_v47 = vpop.permute.xlu1 %210 }
  0x8a   :  { %v206_v50 = vpop.permute.xlu0 %205 }
  0x8b   :  { %v201_v52 = vpop.permute.xlu1 %200 }
  0x8e   :  { %v196_v59 = vpop.permute.xlu0 %195 }
  0x8f   :  { %v191_v62 = vpop.permute.xlu1 %190 }
  0x92   :  { %v186_v3 = vpop.permute.xlu0 %185 }
  0x93   :  { %v181_v6 = vpop.permute.xlu1 %180 }
  0xc6   :  { %v498_v20 = vpop.f32.mrf.mxu0 }
  0xc7   :  { %v145_v27 = vadd.f32 %v498_v20, %v45_v21 }
  0xc8   :  { %v139_v22 = vpop.f32.mrf.mxu0 }
  0xc9   :  { %v140_v31 = vadd.f32 %v139_v22, %v40_v30  ;;  %v159_v33 = vmax.f32 %v145_v27, 0.0 }
  0xca   :  { %v501_v23 = vpop.f32.mrf.mxu0 }
  0xcb   :  { %v155_v24 = vadd.f32 %v501_v23, %v55_v19  ;;  %v158_v34 = vmax.f32 %v140_v31, 0.0 }
  0xcc   :  { %v149_v26 = vpop.f32.mrf.mxu0 }
  0xcd   :  { %v161_v28 = vmax.f32 %v155_v24, 0.0  ;;  %v150_v29 = vadd.f32 %v149_v26, %v50_v25 }
  0xcf   :  { %v160_v32 = vmax.f32 %v150_v29, 0.0  ;;  %502 = vmatprep.subr.mxu1 %v161_v28 }
  0xd0   :  { %503 = vmatpush3.msra.mxu1 %v161_v28 }
  0xd1   :  { %504 = vmatprep.subr.mxu1 %v160_v32 }
  0xd2   :  { %505 = vmatpush3.msra.mxu1 %v160_v32 }
  0xd3   :  { %506 = vmatprep.subr.mxu1 %v159_v33 }
  0xd4   :  { %507 = vmatpush3.msra.mxu1 %v159_v33 }
  0xd5   :  { %508 = vmatprep.subr.mxu1 %v158_v34 }
  0xd6   :  { %509 = vmatpush3.msra.mxu1 %v158_v34 }
  0xd7   :  { %511 = vmatmul.mubr.msk.f32.vlgmr.msra.gmra.mxu1 %vm218_vm1, %v163_v35 }
  0xd8   :  { %513 = vmatprep.mubr.msk.f32.mxu1 %vm218_vm1, %v164_v36 }
  0xdb   :  { %514 = vmatmul.mubr.msk.f32.gmra.mxu1 %vm218_vm1, %v165_v37 }
  0xdc   :  { %516 = vmatprep.mubr.msk.f32.mxu1 %vm218_vm1, %v166_v38 }
  0xdf   :  { %517 = vmatmul.mubr.msk.f32.gmra.mxu1 %vm218_vm1, %v167_v39 }
  0xe0   :  { %519 = vmatprep.mubr.msk.f32.mxu1 %vm218_vm1, %v168_v40 }
  0xe3   :  { %520 = vmatmul.mubr.msk.f32.gmra.mxu1 %vm218_vm1, %v169_v41 }
 0x197   :  { %v512_v43 = vpop.f32.mrf.mxu1 }
 0x198   :  { %v315_v4 = vadd.f32 %v512_v43, %v186_v3 }
 0x199   :  { %v309_v44 = vpop.f32.mrf.mxu1 }
 0x19a   :  { %v310_v7 = vadd.f32 %v309_v44, %v181_v6  ;;  %v349_v9 = vmax.f32 %v315_v4, 0.0 }
 0x19b   :  { %v515_v46 = vpop.f32.mrf.mxu1 }
 0x19c   :  { %v325_v63 = vadd.f32 %v515_v46, %v196_v59  ;;  %v348_v10 = vmax.f32 %v310_v7, 0.0 }
 0x19d   :  { %v319_v48 = vpop.f32.mrf.mxu1 }
 0x19e   :  { %v320_v1 = vadd.f32 %v319_v48, %v191_v62  ;;  %v351_v5 = vmax.f32 %v325_v63, 0.0 }
 0x19f   :  { %v518_v49 = vpop.f32.mrf.mxu1 }
 0x1a0   :  { %v335_v56 = vadd.f32 %v518_v49, %v206_v50  ;;  %v350_v8 = vmax.f32 %v320_v1, 0.0 }
 0x1a1   :  { %v329_v51 = vpop.f32.mrf.mxu1 }
 0x1a2   :  { %v330_v60 = vadd.f32 %v329_v51, %v201_v52  ;;  %v353_v0 = vmax.f32 %v335_v56, 0.0 }
 0x1a3   :  { %v521_v53 = vpop.f32.mrf.mxu1 }
 0x1a4   :  { %v345_v54 = vadd.f32 %v521_v53, %v216_v45  ;;  %v352_v2 = vmax.f32 %v330_v60, 0.0 }
 0x1a5   :  { %v339_v55 = vpop.f32.mrf.mxu1 }
 0x1a6   :  { %v355_v57 = vmax.f32 %v345_v54, 0.0  ;;  %v340_v58 = vadd.f32 %v339_v55, %v211_v47 }
 0x1a8   :  { %v354_v61 = vmax.f32 %v340_v58, 0.0  ;;  %523 = vmatpush3.msra.mxu0 %v355_v57 }
 0x1a9   :  { %524 = vmatprep.subr.mxu0 %v574_v42 }
 0x1aa   :  { %525 = vmatpush3.msra.mxu0 %v354_v61 }
 0x1ab   :  { %526 = vmatprep.subr.mxu0 %v574_v42 }
 0x1ac   :  { %527 = vmatpush3.msra.mxu0 %v353_v0 }
 0x1ad   :  { %528 = vmatprep.subr.mxu0 %v574_v42 }
 0x1ae   :  { %529 = vmatpush3.msra.mxu0 %v352_v2 }
 0x1af   :  { %530 = vmatprep.subr.mxu0 %v574_v42 }
 0x1b0   :  { %531 = vmatpush3.msra.mxu0 %v351_v5 }
 0x1b1   :  { %532 = vmatprep.subr.mxu0 %v574_v42 }
 0x1b2   :  { %533 = vmatpush3.msra.mxu0 %v350_v8 }
 0x1b3   :  { %534 = vmatprep.subr.mxu0 %v574_v42 }
 0x1b4   :  { %535 = vmatpush3.msra.mxu0 %v349_v9 }
 0x1b5   :  { %536 = vmatprep.subr.mxu0 %v574_v42 }
 0x1b6   :  { %537 = vmatpush3.msra.mxu0 %v348_v10 }
 0x1b7   :  { %539 = vmatmul.mubr.msk.f32.vlgmr.msra.gmra.mxu0 %vm359_vm3, %v356_v11 }
 0x277   :  { %v429_v13 = vpop.f32.mrf.mxu0 }
 0x278   :  { %v430_v14 = vadd.f32 %v429_v13, %v358_v12 }
 0x279   :  { %v540_v15 = vpop.f32.mrf.mxu0 }
 0x27a   :  { %v433_v16 = vsub.f32 0.0, %v430_v14 }
 0x27c   :  { %v434_v17 = vmul.f32 1.442695, %v433_v16 }
 0x27e   :  { %547 = vpow2.f32 %v434_v17 }
 0x28b   :  { %v548_v18 = vpop.eup %547 }
 0x28c   :  { %v436_v19 = vadd.f32 1.0, %v548_v18 }
 0x28e   :  { %549 = vrcp.f32 %v436_v19 }
 0x29b   :  { %v550_v20 = vpop.eup %549 }
 0x29c   :  { %439 = vst.msk [vmem:[#allocation3] sm:$0x1] %vm438_vm4, %v550_v20 }
 0x29d   :  { %562 = shalt.err (!%p559_p4)
}
 0x29e   :  { %449 = dma.vmem_to_hbm [thread:$0]  %s447_s25, 16, %s722_s7, [#allocation4]  }
 0x29f   :  { %571 = dma.done.wait [#allocation4], 16  }
 0x2a0   :  { %572 = vsyncadd [#allocation4], 4294967280 }
 0x2a1   :  { %453 = vsyncpa [#allocation4], 1 }

</bundles_post_ra>
